<compile_context>
chip_gen: v7x
topology: tpu7x:2x2x1
jax: 0.10.0
libtpu: 0.0.40
codegen_flags: <defaults>
</compile_context>

<pallas_src>
import functools

import jax
import jax.numpy as jnp
from jax.experimental import pallas as pl
from jax.experimental.pallas import tpu as pltpu

IN_FEATURES = 784
H1 = 256
H2 = 256


def _round_up(x, m):
    return ((x + m - 1) // m) * m


def _has_two_tensorcores():
    # v7x has 2 TensorCores per chip (v5e/v6e have 1). Detect via device kind string;
    # on anything else this safely returns False (single-TC behavior).
    try:
        kind = jax.devices()[0].device_kind.lower()
    except Exception:
        return False
    return "v7" in kind


def mlp_kernel(x_ref, w1_ref, b1_ref, w2_ref, b2_ref, o_ref):
    # x_ref: (TILE_B, 784) f32    w1_ref: (784, 256) bf16   b1_ref: (1, 256) f32
    # w2_ref: (256, 256) bf16     b2_ref: (1, 256) f32      o_ref: (TILE_B, 256) out_dtype
    x = x_ref[...].astype(jnp.bfloat16)              # in-kernel cast: VPU work hidden under DMA
    h1 = jnp.dot(x, w1_ref[...], preferred_element_type=jnp.float32) + b1_ref[...]
    h1 = jnp.maximum(h1, 0.0).astype(jnp.bfloat16)   # fused bias + relu + downcast -> bf16 temp
    h2 = jnp.dot(h1, w2_ref[...], preferred_element_type=jnp.float32) + b2_ref[...]
    # relu(fc2(.)); fc3 is intentionally unused (matches torch forward()).
    o_ref[...] = jnp.maximum(h2, 0.0).astype(o_ref.dtype)


@functools.partial(jax.jit, static_argnames=("tile_b", "out_dtype"))
def mlp_forward(din, w1, b1, w2, b2, *, tile_b=1024, out_dtype=jnp.bfloat16):
    # Flatten exactly like torch's din.view(-1, 784). Input stays f32; bf16 cast happens in-kernel.
    x = din.reshape(-1, IN_FEATURES)
    B = x.shape[0]

    # --- batch tile selection -------------------------------------------------
    # Multiples of 16 (bf16 sublane packing); cap at tile_b (default 1024, MXU/HBM friendly).
    Bp16 = _round_up(B, 16)
    TILE_B = min(_round_up(tile_b, 16), Bp16)
    # v7x: ensure the grid has >= 2 steps so ("parallel",) uses both TensorCores.
    if _has_two_tensorcores() and Bp16 >= 32:
        TILE_B = min(TILE_B, _round_up(pl.cdiv(Bp16, 2), 16))
    Bp = _round_up(B, TILE_B)

    padded = Bp != B
    if padded:
        x = jnp.pad(x, ((0, Bp - B), (0, 0)))
    grid = (Bp // TILE_B,)

    out_bytes = jnp.dtype(out_dtype).itemsize
    cost = pl.CostEstimate(
        flops=2 * Bp * (IN_FEATURES * H1 + H1 * H2),
        transcendentals=0,
        bytes_accessed=(Bp * IN_FEATURES * 4          # x read (f32)
                        + IN_FEATURES * H1 * 2        # w1 (bf16)
                        + H1 * H2 * 2                 # w2 (bf16)
                        + (H1 + H2) * 4               # biases (f32)
                        + Bp * H2 * out_bytes),       # output
    )

    out = pl.pallas_call(
        mlp_kernel,
        out_shape=jax.ShapeDtypeStruct((Bp, H2), out_dtype),
        grid=grid,
        in_specs=[
            pl.BlockSpec((TILE_B, IN_FEATURES), lambda i: (i, 0)),  # x tiles: pipelined per step
            pl.BlockSpec((IN_FEATURES, H1), lambda i: (0, 0)),      # weights: VMEM-resident
            pl.BlockSpec((1, H1), lambda i: (0, 0)),
            pl.BlockSpec((H1, H2), lambda i: (0, 0)),
            pl.BlockSpec((1, H2), lambda i: (0, 0)),
        ],
        out_specs=pl.BlockSpec((TILE_B, H2), lambda i: (i, 0)),
        compiler_params=pltpu.CompilerParams(
            dimension_semantics=("parallel",),        # v7x: shard batch across 2 TCs
        ),
        cost_estimate=cost,
    )(x, w1, b1, w2, b2)

    return out[:B] if padded else out


def mlp_reference(din, w1, b1, w2, b2):
    # Pure-JAX reference with the same dtype scheme (bf16 matmul operands, f32 accumulate).
    x = din.reshape(-1, IN_FEATURES).astype(jnp.bfloat16)
    h1 = jnp.maximum(jnp.dot(x, w1, preferred_element_type=jnp.float32) + b1, 0.0)
    h2 = jnp.maximum(
        jnp.dot(h1.astype(jnp.bfloat16), w2, preferred_element_type=jnp.float32) + b2, 0.0)
    return h2


def init_params(key):
    # Deterministic init mimicking torch.nn.Linear default:
    # U(-1/sqrt(in_features), 1/sqrt(in_features)) for weight and bias.
    k1, k2, k3, k4 = jax.random.split(key, 4)

    def lin(kw, kb, fan_in, fan_out):
        bound = 1.0 / jnp.sqrt(jnp.float32(fan_in))
        # stored as (in, out) so the kernel computes x @ W directly; weights in bf16
        w = jax.random.uniform(kw, (fan_in, fan_out), jnp.float32, -bound, bound)
        b = jax.random.uniform(kb, (1, fan_out), jnp.float32, -bound, bound)
        return w.astype(jnp.bfloat16), b

    w1, b1 = lin(k1, k2, IN_FEATURES, H1)
    w2, b2 = lin(k3, k4, H1, H2)
    # fc3 (256 -> 10) exists in the torch module but is unused in forward(); omitted on purpose.
    return w1, b1, w2, b2


if __name__ == "__main__":
    key = jax.random.PRNGKey(0)
    kx, kx2, kx3, kp = jax.random.split(key, 4)

    w1, b1, w2, b2 = init_params(kp)

    # Small MNIST-like input, NCHW: (batch=8, channels=1, 28, 28) -> flattens to (8, 784).
    # Default path: bf16 output, tile rounded to 16.
    din = jax.random.normal(kx, (8, 1, 28, 28), dtype=jnp.float32)
    out = jax.block_until_ready(mlp_forward(din, w1, b1, w2, b2))
    ref = mlp_reference(din, w1, b1, w2, b2)
    assert out.shape == (8, 256)
    assert out.dtype == jnp.bfloat16
    assert jnp.allclose(out.astype(jnp.float32), ref, atol=2e-2, rtol=2e-2)

    # Multi-step batch grid with padding (tile=16, B=40 -> 3 grid steps), f32 output path.
    din2 = jax.random.normal(kx2, (40, 1, 28, 28), dtype=jnp.float32)
    out2 = jax.block_until_ready(
        mlp_forward(din2, w1, b1, w2, b2, tile_b=16, out_dtype=jnp.float32))
    ref2 = mlp_reference(din2, w1, b1, w2, b2)
    assert out2.shape == (40, 256)
    assert out2.dtype == jnp.float32
    assert jnp.allclose(out2, ref2, atol=1e-3, rtol=1e-3)

    # Tile-aligned batch (no pad / no output slice), multi-step grid.
    din3 = jax.random.normal(kx3, (32, 1, 28, 28), dtype=jnp.float32)
    out3 = jax.block_until_ready(mlp_forward(din3, w1, b1, w2, b2, tile_b=16))
    ref3 = mlp_reference(din3, w1, b1, w2, b2)
    assert out3.shape == (32, 256)
    assert jnp.allclose(out3.astype(jnp.float32), ref3, atol=2e-2, rtol=2e-2)

    print("KERNEL_OK")
</pallas_src>

<mosaic_0001>
module attributes {stable_mosaic.version = 11 : i64} {
  func.func @mlp_kernel(%arg0: i32, %arg1: memref<16x784xf32, #tpu.memory_space<vmem>>, %arg2: memref<784x256xbf16, #tpu.memory_space<vmem>>, %arg3: memref<1x256xf32, #tpu.memory_space<vmem>>, %arg4: memref<256x256xbf16, #tpu.memory_space<vmem>>, %arg5: memref<1x256xf32, #tpu.memory_space<vmem>>, %arg6: memref<16x256xbf16, #tpu.memory_space<vmem>>) attributes {dimension_semantics = [#tpu.dimension_semantics<parallel>], iteration_bounds = array<i64: 1>, scalar_prefetch = 0 : i64, scratch_operands = 0 : i64, tpu.core_type = #tpu.core_type<tc>, window_params = [{transform_indices = @transform_0, window_bounds = array<i64: 16, 784>}, {pipeline_mode = #tpu.pipeline_mode<synchronous>, transform_indices = @transform_1, window_bounds = array<i64: 784, 256>}, {pipeline_mode = #tpu.pipeline_mode<synchronous>, transform_indices = @transform_2, window_bounds = array<i64: 1, 256>}, {pipeline_mode = #tpu.pipeline_mode<synchronous>, transform_indices = @transform_3, window_bounds = array<i64: 256, 256>}, {pipeline_mode = #tpu.pipeline_mode<synchronous>, transform_indices = @transform_4, window_bounds = array<i64: 1, 256>}, {transform_indices = @transform_5, window_bounds = array<i64: 16, 256>}]} {
    %c0 = arith.constant 0 : index
    %c0_0 = arith.constant 0 : index
    %0 = vector.load %arg1[%c0, %c0_0] : memref<16x784xf32, #tpu.memory_space<vmem>>, vector<16x784xf32>
    %1 = arith.truncf %0 : vector<16x784xf32> to vector<16x784xbf16>
    %c0_1 = arith.constant 0 : index
    %c0_2 = arith.constant 0 : index
    %2 = vector.load %arg2[%c0_1, %c0_2] : memref<784x256xbf16, #tpu.memory_space<vmem>>, vector<784x256xbf16>
    %cst = arith.constant dense<0.000000e+00> : vector<16x256xf32>
    %3 = tpu.matmul %1, %2, %cst {dimension_numbers = #tpu.dot_dimension_numbers<[1], [0], [0], [1], [0, 0, 1, 1], [], []>} : vector<16x784xbf16>, vector<784x256xbf16>, vector<16x256xf32> -> vector<16x256xf32>
    %c0_3 = arith.constant 0 : index
    %c0_4 = arith.constant 0 : index
    %4 = vector.load %arg3[%c0_3, %c0_4] : memref<1x256xf32, #tpu.memory_space<vmem>>, vector<1x256xf32>
    %5 = vector.broadcast %4 : vector<1x256xf32> to vector<16x256xf32>
    %6 = arith.addf %3, %5 : vector<16x256xf32>
    %cst_5 = arith.constant 0.000000e+00 : f32
    %7 = vector.broadcast %cst_5 : f32 to vector<16x256xf32>
    %8 = arith.maximumf %6, %7 : vector<16x256xf32>
    %9 = arith.truncf %8 : vector<16x256xf32> to vector<16x256xbf16>
    %c0_6 = arith.constant 0 : index
    %c0_7 = arith.constant 0 : index
    %10 = vector.load %arg4[%c0_6, %c0_7] : memref<256x256xbf16, #tpu.memory_space<vmem>>, vector<256x256xbf16>
    %cst_8 = arith.constant dense<0.000000e+00> : vector<16x256xf32>
    %11 = tpu.matmul %9, %10, %cst_8 {dimension_numbers = #tpu.dot_dimension_numbers<[1], [0], [0], [1], [0, 0, 1, 1], [], []>} : vector<16x256xbf16>, vector<256x256xbf16>, vector<16x256xf32> -> vector<16x256xf32>
    %c0_9 = arith.constant 0 : index
    %c0_10 = arith.constant 0 : index
    %12 = vector.load %arg5[%c0_9, %c0_10] : memref<1x256xf32, #tpu.memory_space<vmem>>, vector<1x256xf32>
    %13 = vector.broadcast %12 : vector<1x256xf32> to vector<16x256xf32>
    %14 = arith.addf %11, %13 : vector<16x256xf32>
    %cst_11 = arith.constant 0.000000e+00 : f32
    %15 = vector.broadcast %cst_11 : f32 to vector<16x256xf32>
    %16 = arith.maximumf %14, %15 : vector<16x256xf32>
    %17 = arith.truncf %16 : vector<16x256xf32> to vector<16x256xbf16>
    %c0_12 = arith.constant 0 : index
    %c0_13 = arith.constant 0 : index
    %18 = vector.load %arg6[%c0_12, %c0_13] : memref<16x256xbf16, #tpu.memory_space<vmem>>, vector<16x256xbf16>
    tpu.vector_store %arg6[%c0_12, %c0_13], %17 {strides = array<i32>} : memref<16x256xbf16, #tpu.memory_space<vmem>>, vector<16x256xbf16>,
    return
  }
  func.func @transform_0(%arg0: i32) -> (i32, i32) {
    %c0_i32 = arith.constant 0 : i32
    %c0_i32_0 = arith.constant 0 : i32
    return %arg0, %c0_i32 : i32, i32
  }
  func.func @transform_1(%arg0: i32) -> (i32, i32) {
    %c0_i32 = arith.constant 0 : i32
    %c0_i32_0 = arith.constant 0 : i32
    %c0_i32_1 = arith.constant 0 : i32
    return %c0_i32, %c0_i32_0 : i32, i32
  }
  func.func @transform_2(%arg0: i32) -> (i32, i32) {
    %c0_i32 = arith.constant 0 : i32
    %c0_i32_0 = arith.constant 0 : i32
    %c0_i32_1 = arith.constant 0 : i32
    return %c0_i32, %c0_i32_0 : i32, i32
  }
  func.func @transform_3(%arg0: i32) -> (i32, i32) {
    %c0_i32 = arith.constant 0 : i32
    %c0_i32_0 = arith.constant 0 : i32
    %c0_i32_1 = arith.constant 0 : i32
    return %c0_i32, %c0_i32_0 : i32, i32
  }
  func.func @transform_4(%arg0: i32) -> (i32, i32) {
    %c0_i32 = arith.constant 0 : i32
    %c0_i32_0 = arith.constant 0 : i32
    %c0_i32_1 = arith.constant 0 : i32
    return %c0_i32, %c0_i32_0 : i32, i32
  }
  func.func @transform_5(%arg0: i32) -> (i32, i32) {
    %c0_i32 = arith.constant 0 : i32
    %c0_i32_0 = arith.constant 0 : i32
    return %arg0, %c0_i32 : i32, i32
  }
}

</mosaic_0001>

<bundles_post_ra>
// kernel: mlp_forward.1
= control target key start
LH: loop header
LB: loop body
LE: loop exit
PB: predicated region body
PF: predicated region fallthrough
CT: control target
= control target key end

     0   :  { %10 = vsyncpa [#allocation3], 0  ;;  %s1482_s18 = smov [#allocation2]   ;;  %s1876_s0 = inlined_call_operand.vmem [shape: f32[16,784], index: 0, kind: input, shape index: {}]   ;;  %s1877_s1 = inlined_call_operand.vmem [shape: bf16[784,256], index: 1, kind: input, shape index: {}]   ;;  %s1878_s2 = inlined_call_operand.vmem [shape: f32[1,256], index: 2, kind: input, shape index: {}]   ;;  %s1879_s3 = inlined_call_operand.hbm [shape: bf16[256,256], index: 3, kind: input, shape index: {}]   ;;  %s1880_s4 = inlined_call_operand.vmem [shape: f32[1,256], index: 4, kind: input, shape index: {}]   ;;  %s1881_s5 = inlined_call_operand.vmem [shape: bf16[16,256], index: 5, kind: output, shape index: {}]  }
   0x1   :  { %s22_s19 = sshll.u32 %s1482_s18, 4  ;;  %s1458_s22 = scalar_lea.hbm %s1879_s3, 4096  ;;  %s23_s19 = int_to_ptr.vmem [resolvable:$true] %s22_s19 }
   0x2   :  { %p1459_p0 = scmp.ne.s32.totalorder %s1879_s3, %s1458_s22  ;;  %p1462_p1 = scmp.lt.u32.totalorder %s1458_s22, %s1879_s3 }
   0x4   :  { %p1464_p2 = pnand %p1462_p1, %p1459_p0 }
   0x6   :  { %1467 = shalt.err (!%p1464_p2)
}
   0x7   :  { %s1468_s27 = scalar_lea.vmem %s23_s19, 4096  ;;  %p1473_p4 = scmp.lt.s32.totalorder %s23_s19, %s23_s19 }
   0x8   :  { %p1469_p3 = scmp.ne.s32.totalorder %s23_s19, %s1468_s27  ;;  %p1474_p5 = scmp.lt.s32.totalorder %s1468_s27, %s1468_s27 }
   0xa   :  { %p1475_p6 = por %p1474_p5, %p1473_p4 }
   0xc   :  { %p1476_p7 = pnand %p1475_p6, %p1469_p3 }
   0xe   :  { %1479 = shalt.err (!%p1476_p7)
}
   0xf   :  { %s1483_s28 = smov 128   ;;  %s1484_s29 = smov 8  }
  0x10   :  { %28 = dma.hbm_to_vmem [thread:$0]  %s1879_s3, 4096, %s23_s19, [#allocation3], %s1483_s28, %s1483_s28, %s1484_s29  }
  0x11   :  { %1480 = dma.done.wait [#allocation3], 4096  }
  0x12   :  { %1481 = vsyncadd [#allocation3], 4294963200  ;;  %v1263_v0 = vld [vmem:[%s1877_s1 + $0x104] ss:$8 sps:$4 sm:$0xff]   ;;  %v1265_v1 = vld [vmem:[%s1877_s1 + $0x100] ss:$8 sps:$4 sm:$0xff]  }
  0x13   :  { %703 = vmatprep.subr.bf16.mxu0 %v1263_v0  ;;  %v1266_v2 = vld [vmem:[%s1877_s1 + $0x114] ss:$8 sps:$4 sm:$0xff]   ;;  %v1268_v3 = vld [vmem:[%s1877_s1 + $0x110] ss:$8 sps:$4 sm:$0xff]   ;;  %v1269_v4 = vld [vmem:[%s1877_s1 + $0x124] ss:$8 sps:$4 sm:$0xff]  }
  0x14   :  { %704 = vmatpush1.bf16.msra.mxu0 %v1265_v1  ;;  %v1271_v5 = vld [vmem:[%s1877_s1 + $0x120] ss:$8 sps:$4 sm:$0xff]   ;;  %v1272_v6 = vld [vmem:[%s1877_s1 + $0x134] ss:$8 sps:$4 sm:$0xff]   ;;  %v1274_v7 = vld [vmem:[%s1877_s1 + $0x130] ss:$8 sps:$4 sm:$0xff]  }
  0x15   :  { %705 = vmatprep.subr.bf16.mxu0 %v1266_v2  ;;  %v1275_v8 = vld [vmem:[%s1877_s1 + $0x144] ss:$8 sps:$4 sm:$0xff]   ;;  %v1277_v9 = vld [vmem:[%s1877_s1 + $0x140] ss:$8 sps:$4 sm:$0xff]   ;;  %v1278_v10 = vld [vmem:[%s1877_s1 + $0x154] ss:$8 sps:$4 sm:$0xff]  }
  0x16   :  { %v1280_v11 = vld [vmem:[%s1877_s1 + $0x150] ss:$8 sps:$4 sm:$0xff]   ;;  %v1281_v12 = vld [vmem:[%s1877_s1 + $0x164] ss:$8 sps:$4 sm:$0xff]   ;;  %v1283_v16 = vld [vmem:[%s1877_s1 + $0x160] ss:$8 sps:$4 sm:$0xff]  }
  0x17   :  { %v38_v13 = vld [vmem:[%s1876_s0 + $0x18] sm:$0xff]  ;;  %v45_v14 = vld [vmem:[%s1876_s0 + $0x50] sm:$0xff]  ;;  %v1317_v18 = vld [vmem:[%s1877_s1 + $0x4] ss:$8 sps:$4 sm:$0xff]   ;;  %vm656_vm0 = vcmask 130048  }
  0x18   :  { %706 = vmatpush1.bf16.msra.mxu0 %v1268_v3  ;;  %v52_v15 = vpack.c.bf16 %v45_v14, %v38_v13  ;;  %v1284_v17 = vld [vmem:[%s1877_s1 + $0x174] ss:$8 sps:$4 sm:$0xff]   ;;  %v1286_v19 = vld [vmem:[%s1877_s1 + $0x170] ss:$8 sps:$4 sm:$0xff]   ;;  %v1287_v20 = vld [vmem:[%s1877_s1 + $0x184] ss:$8 sps:$4 sm:$0xff]   ;;  %660 = vmatprep.subr.bf16.mxu1 %v1317_v18 }
  0x19   :  { %707 = vmatprep.subr.bf16.mxu0 %v1269_v4  ;;  %v1322_v21 = vld [vmem:[%s1877_s1] ss:$8 sps:$4 sm:$0xff]   ;;  %v1323_v22 = vld [vmem:[%s1877_s1 + $0x14] ss:$8 sps:$4 sm:$0xff]   ;;  %v1328_v24 = vld [vmem:[%s1877_s1 + $0x10] ss:$8 sps:$4 sm:$0xff]  }
  0x1a   :  { %735 = vmatprep.mubr.bf16.mxu0 %v52_v15  ;;  %661 = vmatpush1.bf16.msra.mxu1 %v1322_v21  ;;  %v1289_v23 = vld [vmem:[%s1877_s1 + $0x180] ss:$8 sps:$4 sm:$0xff]   ;;  %v1329_v25 = vld [vmem:[%s1877_s1 + $0x24] ss:$8 sps:$4 sm:$0xff]   ;;  %v1290_v26 = vld [vmem:[%s1877_s1 + $0x194] ss:$8 sps:$4 sm:$0xff]  }
  0x1b   :  { %662 = vmatprep.subr.bf16.mxu1 %v1323_v22  ;;  %v1334_v27 = vld [vmem:[%s1877_s1 + $0x20] ss:$8 sps:$4 sm:$0xff]   ;;  %v1335_v28 = vld [vmem:[%s1877_s1 + $0x34] ss:$8 sps:$4 sm:$0xff]   ;;  %v1292_v29 = vld [vmem:[%s1877_s1 + $0x190] ss:$8 sps:$4 sm:$0xff]  }
  0x1c   :  { %708 = vmatpush1.bf16.msra.mxu0 %v1271_v5  ;;  %v1293_v30 = vld [vmem:[%s1877_s1 + $0x1a4] ss:$8 sps:$4 sm:$0xff]   ;;  %v1340_v31 = vld [vmem:[%s1877_s1 + $0x30] ss:$8 sps:$4 sm:$0xff]   ;;  %v1295_v33 = vld [vmem:[%s1877_s1 + $0x1a0] ss:$8 sps:$4 sm:$0xff]  }
  0x1d   :  { %709 = vmatprep.subr.bf16.mxu0 %v1272_v6  ;;  %v1341_v32 = vld [vmem:[%s1877_s1 + $0x44] ss:$8 sps:$4 sm:$0xff]   ;;  %v1296_v34 = vld [vmem:[%s1877_s1 + $0x1b4] ss:$8 sps:$4 sm:$0xff]   ;;  %v1346_v35 = vld [vmem:[%s1877_s1 + $0x40] ss:$8 sps:$4 sm:$0xff]  }
  0x1e   :  { %663 = vmatpush1.bf16.msra.mxu1 %v1328_v24  ;;  %v1347_v36 = vld [vmem:[%s1877_s1 + $0x54] ss:$8 sps:$4 sm:$0xff]   ;;  %v1298_v37 = vld [vmem:[%s1877_s1 + $0x1b0] ss:$8 sps:$4 sm:$0xff]   ;;  %v1299_v38 = vld [vmem:[%s1877_s1 + $0x1c4] ss:$8 sps:$4 sm:$0xff]  }
  0x1f   :  { %664 = vmatprep.subr.bf16.mxu1 %v1329_v25  ;;  %v1352_v39 = vld [vmem:[%s1877_s1 + $0x50] ss:$8 sps:$4 sm:$0xff]   ;;  %v1353_v40 = vld [vmem:[%s1877_s1 + $0x64] ss:$8 sps:$4 sm:$0xff]   ;;  %v1301_v41 = vld [vmem:[%s1877_s1 + $0x1c0] ss:$8 sps:$4 sm:$0xff]  }
  0x20   :  { %710 = vmatpush1.bf16.msra.mxu0 %v1274_v7  ;;  %v1302_v42 = vld [vmem:[%s1877_s1 + $0x1d4] ss:$8 sps:$4 sm:$0xff]   ;;  %v1358_v43 = vld [vmem:[%s1877_s1 + $0x60] ss:$8 sps:$4 sm:$0xff]   ;;  %v1304_v45 = vld [vmem:[%s1877_s1 + $0x1d0] ss:$8 sps:$4 sm:$0xff]  }
  0x21   :  { %711 = vmatprep.subr.bf16.mxu0 %v1275_v8  ;;  %v1359_v44 = vld [vmem:[%s1877_s1 + $0x74] ss:$8 sps:$4 sm:$0xff]   ;;  %v1305_v46 = vld [vmem:[%s1877_s1 + $0x1e4] ss:$8 sps:$4 sm:$0xff]   ;;  %v1364_v47 = vld [vmem:[%s1877_s1 + $0x70] ss:$8 sps:$4 sm:$0xff]  }
  0x22   :  { %665 = vmatpush1.bf16.msra.mxu1 %v1334_v27  ;;  %v1365_v48 = vld [vmem:[%s1877_s1 + $0x84] ss:$8 sps:$4 sm:$0xff]   ;;  %v1307_v49 = vld [vmem:[%s1877_s1 + $0x1e0] ss:$8 sps:$4 sm:$0xff]   ;;  %v1308_v50 = vld [vmem:[%s1877_s1 + $0x1f4] ss:$8 sps:$4 sm:$0xff]  }
  0x23   :  { %666 = vmatprep.subr.bf16.mxu1 %v1335_v28  ;;  %v1370_v51 = vld [vmem:[%s1877_s1 + $0x80] ss:$8 sps:$4 sm:$0xff]   ;;  %v1371_v52 = vld [vmem:[%s1877_s1 + $0x94] ss:$8 sps:$4 sm:$0xff]   ;;  %v1310_v53 = vld [vmem:[%s1877_s1 + $0x1f0] ss:$8 sps:$4 sm:$0xff]  }
  0x24   :  { %712 = vmatpush1.bf16.msra.mxu0 %v1277_v9  ;;  %v37_v54 = vld [vmem:[%s1876_s0 + $0x10] sm:$0xff]  ;;  %v44_v55 = vld [vmem:[%s1876_s0 + $0x48] sm:$0xff]  ;;  %v47_v62 = vld [vmem:[%s1876_s0 + $0x60] sm:$0xff] }
  0x25   :  { %713 = vmatprep.subr.bf16.mxu0 %v1278_v10  ;;  %v1313_v56 = vld [vmem:[%s1877_s1 + $0x204] ss:$8 sps:$4 sm:$0xff]   ;;  %v1376_v57 = vld [vmem:[%s1877_s1 + $0x90] ss:$8 sps:$4 sm:$0xff]   ;;  %v1311_v58 = vld [vmem:[%s1877_s1 + $0x200] ss:$8 sps:$4 sm:$0xff]   ;;  %v51_v59 = vpack.c.bf16 %v44_v55, %v37_v54 }
  0x26   :  { %667 = vmatpush1.bf16.msra.mxu1 %v1340_v31  ;;  %v1377_v60 = vld [vmem:[%s1877_s1 + $0xa4] ss:$8 sps:$4 sm:$0xff]   ;;  %v1316_v63 = vld [vmem:[%s1877_s1 + $0x214] ss:$8 sps:$4 sm:$0xff]   ;;  %v1382_v1 = vld [vmem:[%s1877_s1 + $0xa0] ss:$8 sps:$4 sm:$0xff]  }
  0x27   :  { %668 = vmatprep.subr.bf16.mxu1 %v1341_v32  ;;  %v40_v61 = vld [vmem:[%s1876_s0 + $0x28] sm:$0xff]  ;;  %v1383_v2 = vld [vmem:[%s1877_s1 + $0xb4] ss:$8 sps:$4 sm:$0xff]   ;;  %v1314_v3 = vld [vmem:[%s1877_s1 + $0x210] ss:$8 sps:$4 sm:$0xff]  }
  0x28   :  { %714 = vmatpush1.bf16.msra.mxu0 %v1280_v11  ;;  %v54_v0 = vpack.c.bf16 %v47_v62, %v40_v61  ;;  %v1321_v4 = vld [vmem:[%s1877_s1 + $0x224] ss:$8 sps:$4 sm:$0xff]   ;;  %v1388_v7 = vld [vmem:[%s1877_s1 + $0xb0] ss:$8 sps:$4 sm:$0xff]   ;;  %v1319_v10 = vld [vmem:[%s1877_s1 + $0x220] ss:$8 sps:$4 sm:$0xff]  }
  0x29   :  { %715 = vmatprep.subr.bf16.mxu0 %v1281_v12  ;;  %v36_v5 = vld [vmem:[%s1876_s0 + $0x8] sm:$0xff]  ;;  %v43_v6 = vld [vmem:[%s1876_s0 + $0x40] sm:$0xff]  ;;  %v1327_v11 = vld [vmem:[%s1877_s1 + $0x234] ss:$8 sps:$4 sm:$0xff]  }
  0x2a   :  { %669 = vmatpush1.bf16.msra.mxu1 %v1346_v35  ;;  %v50_v8 = vpack.c.bf16 %v43_v6, %v36_v5  ;;  %v1389_v9 = vld [vmem:[%s1877_s1 + $0xc4] ss:$8 sps:$4 sm:$0xff]   ;;  %v1394_v12 = vld [vmem:[%s1877_s1 + $0xc0] ss:$8 sps:$4 sm:$0xff]   ;;  %v1395_v13 = vld [vmem:[%s1877_s1 + $0xd4] ss:$8 sps:$4 sm:$0xff]  }
  0x2b   :  { %670 = vmatprep.subr.bf16.mxu1 %v1347_v36  ;;  %v1325_v14 = vld [vmem:[%s1877_s1 + $0x230] ss:$8 sps:$4 sm:$0xff]   ;;  %v1333_v15 = vld [vmem:[%s1877_s1 + $0x244] ss:$8 sps:$4 sm:$0xff]   ;;  %v1331_v18 = vld [vmem:[%s1877_s1 + $0x240] ss:$8 sps:$4 sm:$0xff]  }
  0x2c   :  { %716 = vmatpush1.bf16.msra.mxu0 %v1283_v16  ;;  %692 = vmatprep.mubr.bf16.mxu1 %v50_v8  ;;  %v1400_v16 = vld [vmem:[%s1877_s1 + $0xd0] ss:$8 sps:$4 sm:$0xff]   ;;  %v1407_v21 = vld [vmem:[%s1877_s1 + $0xf4] ss:$8 sps:$4 sm:$0xff]   ;;  %v35_v25 = vld [vmem:[%s1876_s0] sm:$0xff] }
  0x2d   :  { %717 = vmatprep.subr.bf16.mxu0 %v1284_v17  ;;  %v1401_v17 = vld [vmem:[%s1877_s1 + $0xe4] ss:$8 sps:$4 sm:$0xff]   ;;  %v1337_v22 = vld [vmem:[%s1877_s1 + $0x250] ss:$8 sps:$4 sm:$0xff]   ;;  %v1412_v27 = vld [vmem:[#allocation2 + $0x4] ss:$8 sps:$4 sm:$0xff]  }
  0x2e   :  { %671 = vmatpush1.bf16.msra.mxu1 %v1352_v39  ;;  %v1409_v24 = vld [vmem:[%s1877_s1 + $0xf0] ss:$8 sps:$4 sm:$0xff]   ;;  %v1343_v28 = vld [vmem:[%s1877_s1 + $0x260] ss:$8 sps:$4 sm:$0xff]   ;;  %v1415_v32 = vld [vmem:[#allocation2 + $0x14] ss:$8 sps:$4 sm:$0xff]  }
  0x2f   :  { %672 = vmatprep.subr.bf16.mxu1 %v1353_v40  ;;  %v1410_v31 = vld [vmem:[#allocation2] ss:$8 sps:$4 sm:$0xff]   ;;  %v1413_v35 = vld [vmem:[#allocation2 + $0x10] ss:$8 sps:$4 sm:$0xff]   ;;  %v1418_v36 = vld [vmem:[#allocation2 + $0x24] ss:$8 sps:$4 sm:$0xff]  }
  0x30   :  { %718 = vmatpush1.bf16.msra.mxu0 %v1286_v19  ;;  %v1339_v19 = vld [vmem:[%s1877_s1 + $0x254] ss:$8 sps:$4 sm:$0xff]   ;;  %v1416_v39 = vld [vmem:[#allocation2 + $0x20] ss:$8 sps:$4 sm:$0xff]   ;;  %v1421_v40 = vld [vmem:[#allocation2 + $0x34] ss:$8 sps:$4 sm:$0xff]  }
  0x31   :  { %719 = vmatprep.subr.bf16.mxu0 %v1287_v20  ;;  %v1406_v20 = vld [vmem:[%s1877_s1 + $0xe0] ss:$8 sps:$4 sm:$0xff]   ;;  %v1387_v54 = vld [vmem:[%s1877_s1 + $0x2d4] ss:$8 sps:$4 sm:$0xff]   ;;  %v1428_v55 = vld [vmem:[#allocation2 + $0x60] ss:$8 sps:$4 sm:$0xff]  }
  0x32   :  { %673 = vmatpush1.bf16.msra.mxu1 %v1358_v43  ;;  %v1419_v43 = vld [vmem:[#allocation2 + $0x30] ss:$8 sps:$4 sm:$0xff]   ;;  %v1399_v62 = vld [vmem:[%s1877_s1 + $0x2f4] ss:$8 sps:$4 sm:$0xff]  }
  0x33   :  { %674 = vmatprep.subr.bf16.mxu1 %v1359_v44  ;;  %v1424_v44 = vld [vmem:[#allocation2 + $0x44] ss:$8 sps:$4 sm:$0xff]   ;;  %v1391_v61 = vld [vmem:[%s1877_s1 + $0x2e0] ss:$8 sps:$4 sm:$0xff]  }
  0x34   :  { %720 = vmatpush1.bf16.msra.mxu0 %v1289_v23  ;;  %v1345_v23 = vld [vmem:[%s1877_s1 + $0x264] ss:$8 sps:$4 sm:$0xff]   ;;  %v1437_v5 = vld [vmem:[#allocation2 + $0x90] ss:$8 sps:$4 sm:$0xff]  }
  0x35   :  { %721 = vmatprep.subr.bf16.mxu0 %v1290_v26  ;;  %v42_v26 = vld [vmem:[%s1876_s0 + $0x38] sm:$0xff]  ;;  %v1403_v8 = vld [vmem:[%s1877_s1 + $0x300] ss:$8 sps:$4 sm:$0xff]  }
  0x36   :  { %675 = vmatpush1.bf16.msra.mxu1 %v1364_v47  ;;  %v1422_v47 = vld [vmem:[#allocation2 + $0x40] ss:$8 sps:$4 sm:$0xff]  }
  0x37   :  { %676 = vmatprep.subr.bf16.mxu1 %v1365_v48  ;;  %v1427_v48 = vld [vmem:[#allocation2 + $0x54] ss:$8 sps:$4 sm:$0xff]  }
  0x38   :  { %722 = vmatpush1.bf16.msra.mxu0 %v1292_v29  ;;  %v1351_v29 = vld [vmem:[%s1877_s1 + $0x274] ss:$8 sps:$4 sm:$0xff]  }
  0x39   :  { %723 = vmatprep.subr.bf16.mxu0 %v1293_v30  ;;  %v49_v30 = vpack.c.bf16 %v42_v26, %v35_v25 }
  0x3a   :  { %677 = vmatpush1.bf16.msra.mxu1 %v1370_v51  ;;  %v1425_v51 = vld [vmem:[#allocation2 + $0x50] ss:$8 sps:$4 sm:$0xff]  }
  0x3b   :  { %678 = vmatprep.subr.bf16.mxu1 %v1371_v52  ;;  %v1430_v52 = vld [vmem:[#allocation2 + $0x64] ss:$8 sps:$4 sm:$0xff]  }
  0x3c   :  { %724 = vmatpush1.bf16.msra.mxu0 %v1295_v33  ;;  %v1349_v33 = vld [vmem:[%s1877_s1 + $0x270] ss:$8 sps:$4 sm:$0xff]  }
  0x3d   :  { %725 = vmatprep.subr.bf16.mxu0 %v1296_v34  ;;  %v1357_v34 = vld [vmem:[%s1877_s1 + $0x284] ss:$8 sps:$4 sm:$0xff]  }
  0x3e   :  { %679 = vmatpush1.bf16.msra.mxu1 %v1376_v57  ;;  %v1385_v57 = vld [vmem:[%s1877_s1 + $0x2d0] ss:$8 sps:$4 sm:$0xff]  }
  0x3f   :  { %680 = vmatprep.subr.bf16.mxu1 %v1377_v60  ;;  %v1436_v60 = vld [vmem:[#allocation2 + $0x84] ss:$8 sps:$4 sm:$0xff]  }
  0x40   :  { %726 = vmatpush1.bf16.msra.mxu0 %v1298_v37  ;;  %v1355_v37 = vld [vmem:[%s1877_s1 + $0x280] ss:$8 sps:$4 sm:$0xff]  }
  0x41   :  { %727 = vmatprep.subr.bf16.mxu0 %v1299_v38  ;;  %v1363_v38 = vld [vmem:[%s1877_s1 + $0x294] ss:$8 sps:$4 sm:$0xff]  }
  0x42   :  { %681 = vmatpush1.bf16.msra.mxu1 %v1382_v1  ;;  %v1397_v1 = vld [vmem:[%s1877_s1 + $0x2f0] ss:$8 sps:$4 sm:$0xff]  }
  0x43   :  { %682 = vmatprep.subr.bf16.mxu1 %v1383_v2  ;;  %v39_v2 = vld [vmem:[%s1876_s0 + $0x20] sm:$0xff] }
  0x44   :  { %728 = vmatpush1.bf16.msra.mxu0 %v1301_v41  ;;  %v1361_v41 = vld [vmem:[%s1877_s1 + $0x290] ss:$8 sps:$4 sm:$0xff]  }
  0x45   :  { %729 = vmatprep.subr.bf16.mxu0 %v1302_v42  ;;  %v1369_v42 = vld [vmem:[%s1877_s1 + $0x2a4] ss:$8 sps:$4 sm:$0xff]  }
  0x46   :  { %683 = vmatpush1.bf16.msra.mxu1 %v1388_v7  ;;  %v1442_v7 = vld [vmem:[#allocation2 + $0xa4] ss:$8 sps:$4 sm:$0xff]  }
  0x47   :  { %684 = vmatprep.subr.bf16.mxu1 %v1389_v9  ;;  %v1440_v9 = vld [vmem:[#allocation2 + $0xa0] ss:$8 sps:$4 sm:$0xff]  }
  0x48   :  { %730 = vmatpush1.bf16.msra.mxu0 %v1304_v45  ;;  %v1367_v45 = vld [vmem:[%s1877_s1 + $0x2a0] ss:$8 sps:$4 sm:$0xff]  }
  0x49   :  { %731 = vmatprep.subr.bf16.mxu0 %v1305_v46  ;;  %v1375_v46 = vld [vmem:[%s1877_s1 + $0x2b4] ss:$8 sps:$4 sm:$0xff]  }
  0x4a   :  { %685 = vmatpush1.bf16.msra.mxu1 %v1394_v12  ;;  %v1443_v12 = vld [vmem:[#allocation2 + $0xb0] ss:$8 sps:$4 sm:$0xff]  }
  0x4b   :  { %686 = vmatprep.subr.bf16.mxu1 %v1395_v13  ;;  %v1448_v13 = vld [vmem:[#allocation2 + $0xc4] ss:$8 sps:$4 sm:$0xff]  }
  0x4c   :  { %732 = vmatpush1.bf16.msra.mxu0 %v1307_v49  ;;  %v1373_v49 = vld [vmem:[%s1877_s1 + $0x2b0] ss:$8 sps:$4 sm:$0xff]  }
  0x4d   :  { %733 = vmatprep.subr.bf16.mxu0 %v1308_v50  ;;  %v1381_v50 = vld [vmem:[%s1877_s1 + $0x2c4] ss:$8 sps:$4 sm:$0xff]  }
  0x4e   :  { %687 = vmatpush1.bf16.msra.mxu1 %v1400_v16  ;;  %v1446_v16 = vld [vmem:[#allocation2 + $0xc0] ss:$8 sps:$4 sm:$0xff]  }
  0x4f   :  { %688 = vmatprep.subr.bf16.mxu1 %v1401_v17 }
  0x50   :  { %734 = vmatpush1.bf16.msra.mxu0 %v1310_v53  ;;  %v1379_v53 = vld [vmem:[%s1877_s1 + $0x2c0] ss:$8 sps:$4 sm:$0xff]  }
  0x51   :  { %746 = vmatprep.subr.bf16.mxu0 %v1313_v56  ;;  %v1433_v56 = vld [vmem:[#allocation2 + $0x74] ss:$8 sps:$4 sm:$0xff]  }
  0x52   :  { %689 = vmatpush1.bf16.msra.mxu1 %v1406_v20  ;;  %v1454_v20 = vld [vmem:[#allocation2 + $0xe4] ss:$8 sps:$4 sm:$0xff]  }
  0x53   :  { %736 = vmatmul.mubr.bf16.vlgmr.msra.gmra.mrb[0].mxu0 %v51_v59  ;;  %690 = vmatprep.subr.bf16.mxu1 %v1407_v21  ;;  %v1431_v59 = vld [vmem:[#allocation2 + $0x70] ss:$8 sps:$4 sm:$0xff]   ;;  %v1452_v21 = vld [vmem:[#allocation2 + $0xe0] ss:$8 sps:$4 sm:$0xff]  }
  0x54   :  { %747 = vmatpush1.bf16.msra.mxu0 %v1311_v58  ;;  %778 = vmatprep.mubr.bf16.mxu0 %v54_v0  ;;  %v1393_v58 = vld [vmem:[%s1877_s1 + $0x2e4] ss:$8 sps:$4 sm:$0xff]  }
  0x55   :  { %748 = vmatprep.subr.bf16.mxu0 %v1316_v63  ;;  %v1434_v63 = vld [vmem:[#allocation2 + $0x80] ss:$8 sps:$4 sm:$0xff]   ;;  %v1439_v0 = vld [vmem:[#allocation2 + $0x94] ss:$8 sps:$4 sm:$0xff]  }
  0x56   :  { %691 = vmatpush1.bf16.msra.mxu1 %v1409_v24 }
  0x57   :  { %1042 = vmatprep.subr.bf16.mxu1 %v1412_v27 }
  0x58   :  { %749 = vmatpush1.bf16.msra.mxu0 %v1314_v3  ;;  %v46_v3 = vld [vmem:[%s1876_s0 + $0x58] sm:$0xff] }
  0x59   :  { %750 = vmatprep.subr.bf16.mxu0 %v1321_v4  ;;  %693 = vmatmul.mubr.bf16.vlgmr.msra.gmra.mrb[0].mxu1 %v49_v30  ;;  %v1405_v4 = vld [vmem:[%s1877_s1 + $0x304] ss:$8 sps:$4 sm:$0xff]   ;;  %v53_v6 = vpack.c.bf16 %v46_v3, %v39_v2 }
  0x5a   :  { %1043 = vmatpush1.bf16.msra.mxu1 %v1410_v31  ;;  %v154_v31 = vld [vmem:[%s1878_s2] sm:$0x3] }
  0x5b   :  { %1044 = vmatprep.subr.bf16.mxu1 %v1415_v32 }
  0x5c   :  { %751 = vmatpush1.bf16.msra.mxu0 %v1319_v10  ;;  %v1445_v10 = vld [vmem:[#allocation2 + $0xb4] ss:$8 sps:$4 sm:$0xff]  }
  0x5d   :  { %752 = vmatprep.subr.bf16.mxu0 %v1327_v11  ;;  %v1485_v11 = vmov 0  }
  0x5e   :  { %1045 = vmatpush1.bf16.msra.mxu1 %v1413_v35 }
  0x5f   :  { %1046 = vmatprep.subr.bf16.mxu1 %v1418_v36 }
  0x60   :  { %753 = vmatpush1.bf16.msra.mxu0 %v1325_v14  ;;  %v41_v14 = vld [vmem:[%s1876_s0 + $0x30] sm:$0xff] }
  0x61   :  { %754 = vmatprep.subr.bf16.mxu0 %v1333_v15  ;;  %v48_v15 = vld [vmem:[%s1876_s0 + $0x68] sm:$0xff] }
  0x62   :  { %1047 = vmatpush1.bf16.msra.mxu1 %v1416_v39  ;;  %v55_v17 = vpack.c.bf16 %v48_v15, %v41_v14 }
  0x63   :  { %1048 = vmatprep.subr.bf16.mxu1 %v1421_v40 }
  0x64   :  { %755 = vmatpush1.bf16.msra.mxu0 %v1331_v18  ;;  %v1449_v18 = vld [vmem:[#allocation2 + $0xd0] ss:$8 sps:$4 sm:$0xff]  }
  0x65   :  { %756 = vmatprep.subr.bf16.mxu0 %v1339_v19  ;;  %v1451_v19 = vld [vmem:[#allocation2 + $0xd4] ss:$8 sps:$4 sm:$0xff]  }
  0x66   :  { %1049 = vmatpush1.bf16.msra.mxu1 %v1419_v43 }
  0x67   :  { %1050 = vmatprep.subr.bf16.mxu1 %v1424_v44 }
  0x68   :  { %757 = vmatpush1.bf16.msra.mxu0 %v1337_v22  ;;  %v1457_v22 = vld [vmem:[#allocation2 + $0xf4] ss:$8 sps:$4 sm:$0xff]  }
  0x69   :  { %758 = vmatprep.subr.bf16.mxu0 %v1345_v23  ;;  %v1455_v23 = vld [vmem:[#allocation2 + $0xf0] ss:$8 sps:$4 sm:$0xff]  }
  0x6a   :  { %1051 = vmatpush1.bf16.msra.mxu1 %v1422_v47 }
  0x6b   :  { %1052 = vmatprep.subr.bf16.mxu1 %v1427_v48 }
  0x6c   :  { %759 = vmatpush1.bf16.msra.mxu0 %v1343_v28  ;;  %v156_v28 = vlaneseq }
  0x6d   :  { %760 = vmatprep.subr.bf16.mxu0 %v1351_v29 }
  0x6e   :  { %1053 = vmatpush1.bf16.msra.mxu1 %v1425_v51  ;;  %v157_v29 = vshrl.u32 %v156_v28, 7 }
  0x6f   :  { %1054 = vmatprep.subr.bf16.mxu1 %v1430_v52 }
  0x70   :  { %761 = vmatpush1.bf16.msra.mxu0 %v1349_v33  ;;  %v158_v30 = vsub.s32 0, %v157_v29  ;;  %v162_v32 = vsub.s32 1, %v157_v29 }
  0x71   :  { %762 = vmatprep.subr.bf16.mxu0 %v1357_v34 }
  0x72   :  { %1055 = vmatpush1.bf16.msra.mxu1 %v1428_v55  ;;  %v159_v33 = vrot.slane %v154_v31, %v158_v30  ;;  %v163_v34 = vrot.slane %v154_v31, %v162_v32 }
  0x73   :  { %1056 = vmatprep.subr.bf16.mxu1 %v1433_v56 }
  0x74   :  { %763 = vmatpush1.bf16.msra.mxu0 %v1355_v37 }
  0x75   :  { %764 = vmatprep.subr.bf16.mxu0 %v1363_v38 }
  0x76   :  { %1057 = vmatpush1.bf16.msra.mxu1 %v1431_v59 }
  0x77   :  { %1058 = vmatprep.subr.bf16.mxu1 %v1436_v60 }
  0x78   :  { %765 = vmatpush1.bf16.msra.mxu0 %v1361_v41 }
  0x79   :  { %766 = vmatprep.subr.bf16.mxu0 %v1369_v42 }
  0x7a   :  { %1059 = vmatpush1.bf16.msra.mxu1 %v1434_v63 }
  0x7b   :  { %1060 = vmatprep.subr.bf16.mxu1 %v1439_v0 }
  0x7c   :  { %767 = vmatpush1.bf16.msra.mxu0 %v1367_v45 }
  0x7d   :  { %768 = vmatprep.subr.bf16.mxu0 %v1375_v46 }
  0x7e   :  { %1061 = vmatpush1.bf16.msra.mxu1 %v1437_v5 }
  0x7f   :  { %1062 = vmatprep.subr.bf16.mxu1 %v1442_v7 }
  0x80   :  { %769 = vmatpush1.bf16.msra.mxu0 %v1373_v49 }
  0x81   :  { %770 = vmatprep.subr.bf16.mxu0 %v1381_v50 }
  0x82   :  { %1063 = vmatpush1.bf16.msra.mxu1 %v1440_v9 }
  0x83   :  { %1064 = vmatprep.subr.bf16.mxu1 %v1445_v10 }
  0x84   :  { %771 = vmatpush1.bf16.msra.mxu0 %v1379_v53  ;;  %v870_v53 = vld [vmem:[%s1880_s4] sm:$0x3] }
  0x85   :  { %772 = vmatprep.subr.bf16.mxu0 %v1387_v54  ;;  %v875_v54 = vrot.slane %v870_v53, %v158_v30  ;;  %v879_v55 = vrot.slane %v870_v53, %v162_v32 }
  0x86   :  { %1065 = vmatpush1.bf16.msra.mxu1 %v1443_v12 }
  0x87   :  { %1066 = vmatprep.subr.bf16.mxu1 %v1448_v13 }
  0x88   :  { %773 = vmatpush1.bf16.msra.mxu0 %v1385_v57 }
  0x89   :  { %774 = vmatprep.subr.bf16.mxu0 %v1393_v58 }
  0x8a   :  { %1067 = vmatpush1.bf16.msra.mxu1 %v1446_v16 }
  0x8b   :  { %1068 = vmatprep.subr.bf16.mxu1 %v1451_v19 }
  0x8c   :  { %775 = vmatpush1.bf16.msra.mxu0 %v1391_v61 }
  0x8d   :  { %776 = vmatprep.subr.bf16.mxu0 %v1399_v62 }
  0x8e   :  { %1069 = vmatpush1.bf16.msra.mxu1 %v1449_v18 }
  0x8f   :  { %1070 = vmatprep.subr.bf16.mxu1 %v1454_v20 }
  0x90   :  { %777 = vmatpush1.bf16.msra.mxu0 %v1397_v1 }
  0x91   :  { %789 = vmatprep.subr.bf16.mxu0 %v1405_v4 }
  0x92   :  { %1071 = vmatpush1.bf16.msra.mxu1 %v1452_v21 }
  0x93   :  { %779 = vmatmul.mubr.bf16.vlgmr.msra.gmra.mrb[0].mxu0 %v53_v6  ;;  %1072 = vmatprep.subr.bf16.mxu1 %v1457_v22 }
  0x94   :  { %790 = vmatpush1.bf16.msra.mxu0 %v1403_v8  ;;  %821 = vmatprep.mubr.bf16.mxu0 %v1485_v11 }
  0x96   :  { %1073 = vmatpush1.bf16.msra.mxu1 %v1455_v23 }
  0x9f   :  { %1206 = vmatmul.mubr.msk.bf16.vlgmr.msra.gmra.mrb[0].mxu0 %vm656_vm0, %v55_v17 }
 0x12c   :  { %v694_v24 = vpop.f32.mrb[0].mxu1 }
 0x12d   :  { %v696_v25 = vpop.f32.mrb[1].mxu1  ;;  %v695_v35 = vadd.f32 %v694_v24, %v159_v33 }
 0x12e   :  { %v698_v26 = vpop.f32.mrb[2].mxu1  ;;  %v697_v36 = vadd.f32 %v696_v25, %v163_v34 }
 0x12f   :  { %v700_v27 = vpop.f32.mrb[3].mxu1  ;;  %v699_v38 = vadd.f32 %v698_v26, %v159_v33 }
 0x130   :  { %v701_v41 = vadd.f32 %v700_v27, %v163_v34 }
 0x172   :  { %v823_v37 = vpop.f32.mrb[0].mxu0 }
 0x173   :  { %v1244_v39 = vadd.f32 %v823_v37, %v695_v35  ;;  %v825_v40 = vpop.f32.mrb[1].mxu0 }
 0x174   :  { %v1246_v42 = vadd.f32 %v825_v40, %v697_v36  ;;  %v827_v43 = vpop.f32.mrb[2].mxu0 }
 0x175   :  { %v1248_v44 = vadd.f32 %v827_v43, %v699_v38  ;;  %v829_v45 = vpop.f32.mrb[3].mxu0  ;;  %v832_v47 = vmax.f32 %v1244_v39, 0.0 }
 0x176   :  { %v1250_v46 = vadd.f32 %v829_v45, %v701_v41  ;;  %v833_v49 = vmax.f32 %v1246_v42, 0.0 }
 0x177   :  { %v834_v48 = vmax.f32 %v1248_v44, 0.0 }
 0x178   :  { %v835_v50 = vmax.f32 %v1250_v46, 0.0 }
 0x179   :  { %v836_v51 = vpack.c.bf16 %v834_v48, %v832_v47 }
 0x17a   :  { %v837_v52 = vpack.c.bf16 %v835_v50, %v833_v49 }
 0x17c   :  { %1074 = vmatprep.mubr.bf16.mxu1 %v837_v52 }
 0x17d   :  { %1075 = vmatmul.mubr.bf16.vlgmr.msra.gmra.mrb[4].mxu1 %v836_v51 }
 0x250   :  { %v1076_v56 = vpop.f32.mrb[4].mxu1 }
 0x251   :  { %v1077_v57 = vadd.f32 %v1076_v56, %v875_v54  ;;  %v1078_v58 = vpop.f32.mrb[5].mxu1 }
 0x252   :  { %v1079_v59 = vadd.f32 %v1078_v58, %v879_v55  ;;  %v1080_v60 = vpop.f32.mrb[6].mxu1 }
 0x253   :  { %v1085_v61 = vmax.f32 %v1077_v57, 0.0  ;;  %v1081_v62 = vadd.f32 %v1080_v60, %v875_v54  ;;  %v1082_v63 = vpop.f32.mrb[7].mxu1 }
 0x254   :  { %v1086_v0 = vmax.f32 %v1079_v59, 0.0  ;;  %v1083_v1 = vadd.f32 %v1082_v63, %v879_v55 }
 0x255   :  { %v1087_v2 = vmax.f32 %v1081_v62, 0.0 }
 0x256   :  { %v1241_v3 = vpack.c.bf16 %v1086_v0, %v1085_v61  ;;  %v1088_v4 = vmax.f32 %v1083_v1, 0.0 }
 0x258   :  { %1101 = vst [vmem:[%s1881_s5] sm:$0xff] %v1241_v3  ;;  %v1242_v5 = vpack.c.bf16 %v1088_v4, %v1087_v2 }
 0x25a   :  { %1102 = vst [vmem:[%s1881_s5 + $0x8] sm:$0xff] %v1242_v5 }
 0x25b   :  { %1107 = vsyncpa [#allocation3], 1 }

</bundles_post_ra>
